<compile_context>
chip_gen: v6e
topology: v6e:2x2x1
jax: 0.10.0
libtpu: 0.0.40
codegen_flags: <defaults>
</compile_context>

<pallas_src>
import functools
import math

import jax
import jax.numpy as jnp
from jax import lax
from jax.experimental import pallas as pl
from jax.experimental.pallas import tpu as pltpu

SPATIAL_DIM = 2
GOAL_HIDDEN = 64
LN_EPS = 1e-4
DROPOUT_P = 0.25

_PACK = 2                          # logical rows per 128-lane row
_LANES = _PACK * GOAL_HIDDEN       # 128 (lane-dense output)
_PACKED_IN = _PACK * SPATIAL_DIM   # 4
_TILE_P_MAX = 1024                 # packed rows per grid step (= 2048 logical rows)


def _goal_encoder_kernel(x_ref, w_ref, b_ref, g_ref, beta_ref, red_ref,
                         *rest, training):
    if training:
        mask_ref, o_ref = rest
    else:
        (o_ref,) = rest

    # Packed Linear: (tile_p, 4) @ (4, 128) on the MXU, f32 accumulation.
    h = jnp.dot(x_ref[...], w_ref[...], preferred_element_type=jnp.float32)
    h = h + b_ref[...]                       # bias broadcast (1, 128)
    h = jnp.maximum(h, 0.0)                  # ReLU (VPU)

    # LayerNorm over each 64-lane half, fused single pass:
    #   block-diag (1/64) averaging matmul gives per-half mean / E[h^2]
    #   already broadcast across the half.
    mean = jnp.dot(h, red_ref[...], preferred_element_type=jnp.float32)
    mean_sq = jnp.dot(h * h, red_ref[...], preferred_element_type=jnp.float32)
    var = mean_sq - mean * mean
    h = (h - mean) * lax.rsqrt(var + LN_EPS)
    h = h * g_ref[...] + beta_ref[...]

    if training:
        # Inverted dropout: mask is already keep/(1-p), precomputed host-side.
        h = h * mask_ref[...]

    o_ref[...] = h.astype(o_ref.dtype)


def init_goal_encoder_params(key,
                             spatial_dim=SPATIAL_DIM,
                             goal_hidden_size=GOAL_HIDDEN):
    """Deterministic init matching nn.Linear / nn.LayerNorm defaults."""
    kw, kb = jax.random.split(key)
    bound = 1.0 / math.sqrt(spatial_dim)
    # Stored already transposed: (in_features, out_features).
    w = jax.random.uniform(kw, (spatial_dim, goal_hidden_size),
                           minval=-bound, maxval=bound, dtype=jnp.float32)
    b = jax.random.uniform(kb, (goal_hidden_size,),
                           minval=-bound, maxval=bound, dtype=jnp.float32)
    gamma = jnp.ones((goal_hidden_size,), jnp.float32)
    beta = jnp.zeros((goal_hidden_size,), jnp.float32)
    return {"w": w, "b": b, "gamma": gamma, "beta": beta}


def _round_up(x, n):
    return ((x + n - 1) // n) * n


def goal_encoder(x, params, *, training=False, rng=None, out_dtype=jnp.float32):
    """Pallas-fused GoalEncoder forward.  x: [..., spatial_dim] -> [..., hidden].

    out_dtype=jnp.bfloat16 nearly halves HBM write traffic (output bytes dominate);
    intermediates stay f32 regardless, so this is safe on v5e as well.
    """
    lead = x.shape[:-1]
    m = int(math.prod(lead)) if lead else 1
    x2 = x.reshape(m, SPATIAL_DIM).astype(jnp.float32)

    # --- row-pair packing + padding to a tile multiple --------------------
    m_pack = -(-m // _PACK)
    tile_p = min(_TILE_P_MAX, _round_up(max(m_pack, 1), 8))
    m_pack_pad = _round_up(m_pack, tile_p)
    m_pad = m_pack_pad * _PACK
    if m_pad != m:
        x2 = jnp.pad(x2, ((0, m_pad - m), (0, 0)))
    x_packed = x2.reshape(m_pack_pad, _PACKED_IN)          # (Mp, 4)

    # --- packed parameters -------------------------------------------------
    w = params["w"].astype(jnp.float32)                    # (2, 64)
    w_packed = jnp.zeros((_PACKED_IN, _LANES), jnp.float32)
    w_packed = w_packed.at[:SPATIAL_DIM, :GOAL_HIDDEN].set(w)
    w_packed = w_packed.at[SPATIAL_DIM:, GOAL_HIDDEN:].set(w)      # block_diag(W, W)
    b_packed = jnp.tile(params["b"].astype(jnp.float32), _PACK).reshape(1, _LANES)
    g_packed = jnp.tile(params["gamma"].astype(jnp.float32), _PACK).reshape(1, _LANES)
    beta_packed = jnp.tile(params["beta"].astype(jnp.float32), _PACK).reshape(1, _LANES)

    # Block-diag averaging matrix: per-64-lane-half mean, broadcast in-half.
    half = jnp.arange(_LANES) // GOAL_HIDDEN
    red = (half[:, None] == half[None, :]).astype(jnp.float32) / GOAL_HIDDEN

    grid = (m_pack_pad // tile_p,)

    def _const(shape):
        # Same block every grid step -> DMA'd once, stays resident in VMEM.
        return pl.BlockSpec(shape, lambda i: (0, 0))

    in_specs = [
        pl.BlockSpec((tile_p, _PACKED_IN), lambda i: (i, 0)),   # x tile
        _const((_PACKED_IN, _LANES)),                           # W packed
        _const((1, _LANES)),                                    # bias
        _const((1, _LANES)),                                    # gamma
        _const((1, _LANES)),                                    # beta
        _const((_LANES, _LANES)),                               # LN averaging matrix
    ]
    args = [x_packed, w_packed, b_packed, g_packed, beta_packed, red]

    if training:
        if rng is None:
            rng = jax.random.PRNGKey(0)
        # TODO(synk): switch to in-kernel pltpu.prng_seed/prng_random_bits with a
        # per-tile seed (seed + program_id) when interpret-mode support is not
        # needed; that removes the mask HBM read entirely.
        keep = jax.random.bernoulli(rng, 1.0 - DROPOUT_P, (m_pad, GOAL_HIDDEN))
        mask = keep.astype(jnp.float32) * (1.0 / (1.0 - DROPOUT_P))
        args.append(mask.reshape(m_pack_pad, _LANES))
        in_specs.append(pl.BlockSpec((tile_p, _LANES), lambda i: (i, 0)))

    kernel = functools.partial(_goal_encoder_kernel, training=training)

    out_packed = pl.pallas_call(
        kernel,
        grid=grid,
        in_specs=in_specs,
        out_specs=pl.BlockSpec((tile_p, _LANES), lambda i: (i, 0)),
        out_shape=jax.ShapeDtypeStruct((m_pack_pad, _LANES), out_dtype),
        compiler_params=pltpu.CompilerParams(
            dimension_semantics=("parallel",),        # shard tiles across TCs (v7x)
            vmem_limit_bytes=32 * 1024 * 1024,        # safe on v5e/v6e/v7x scoped VMEM
        ),
    )(*args)

    out = out_packed.reshape(m_pad, GOAL_HIDDEN)[:m]
    return out.reshape(lead + (GOAL_HIDDEN,))


def _reference_eval(x, params):
    """Pure-JAX reference (eval mode, dropout = identity)."""
    h = x.astype(jnp.float32) @ params["w"] + params["b"]
    h = jnp.maximum(h, 0.0)
    mean = jnp.mean(h, axis=-1, keepdims=True)
    var = jnp.mean((h - mean) ** 2, axis=-1, keepdims=True)
    h = (h - mean) * lax.rsqrt(var + LN_EPS)
    return h * params["gamma"] + params["beta"]


if __name__ == "__main__":
    key = jax.random.PRNGKey(0)
    k_x, k_p, k_d = jax.random.split(key, 3)

    # Small goal-trajectory-like input: (batch=2, seq=8, spatial_dim=2).
    x = jax.random.normal(k_x, (2, 8, SPATIAL_DIM), dtype=jnp.float32)
    params = init_goal_encoder_params(k_p)

    # Eval-mode forward (dropout is identity, matching module.eval()).
    out = jax.block_until_ready(goal_encoder(x, params, training=False))
    ref = _reference_eval(x, params)
    assert out.shape == (2, 8, GOAL_HIDDEN)
    assert jnp.allclose(out, ref, atol=1e-4, rtol=1e-4), "mismatch vs reference"

    # Training-mode path (fused inverted dropout with a host-generated mask).
    out_train = jax.block_until_ready(
        goal_encoder(x, params, training=True, rng=k_d))
    assert out_train.shape == (2, 8, GOAL_HIDDEN)

    print("KERNEL_OK")
</pallas_src>

<mosaic_0001>
module attributes {stable_mosaic.version = 11 : i64} {
  func.func @_goal_encoder_kernel(%arg0: i32, %arg1: memref<8x4xf32, #tpu.memory_space<vmem>>, %arg2: memref<4x128xf32, #tpu.memory_space<vmem>>, %arg3: memref<1x128xf32, #tpu.memory_space<vmem>>, %arg4: memref<1x128xf32, #tpu.memory_space<vmem>>, %arg5: memref<1x128xf32, #tpu.memory_space<vmem>>, %arg6: memref<128x128xf32, #tpu.memory_space<vmem>>, %arg7: memref<8x128xf32, #tpu.memory_space<vmem>>) attributes {dimension_semantics = [#tpu.dimension_semantics<parallel>], iteration_bounds = array<i64: 1>, scalar_prefetch = 0 : i64, scratch_operands = 0 : i64, tpu.core_type = #tpu.core_type<tc>, window_params = [{transform_indices = @transform_0, window_bounds = array<i64: 8, 4>}, {pipeline_mode = #tpu.pipeline_mode<synchronous>, transform_indices = @transform_1, window_bounds = array<i64: 4, 128>}, {pipeline_mode = #tpu.pipeline_mode<synchronous>, transform_indices = @transform_2, window_bounds = array<i64: 1, 128>}, {pipeline_mode = #tpu.pipeline_mode<synchronous>, transform_indices = @transform_3, window_bounds = array<i64: 1, 128>}, {pipeline_mode = #tpu.pipeline_mode<synchronous>, transform_indices = @transform_4, window_bounds = array<i64: 1, 128>}, {pipeline_mode = #tpu.pipeline_mode<synchronous>, transform_indices = @transform_5, window_bounds = array<i64: 128, 128>}, {transform_indices = @transform_6, window_bounds = array<i64: 8, 128>}]} {
    %c0 = arith.constant 0 : index
    %c0_0 = arith.constant 0 : index
    %0 = vector.load %arg1[%c0, %c0_0] : memref<8x4xf32, #tpu.memory_space<vmem>>, vector<8x4xf32>
    %c0_1 = arith.constant 0 : index
    %c0_2 = arith.constant 0 : index
    %1 = vector.load %arg2[%c0_1, %c0_2] : memref<4x128xf32, #tpu.memory_space<vmem>>, vector<4x128xf32>
    %cst = arith.constant dense<0.000000e+00> : vector<8x128xf32>
    %2 = tpu.matmul %0, %1, %cst {dimension_numbers = #tpu.dot_dimension_numbers<[1], [0], [0], [1], [0, 0, 1, 1], [], []>} : vector<8x4xf32>, vector<4x128xf32>, vector<8x128xf32> -> vector<8x128xf32>
    %c0_3 = arith.constant 0 : index
    %c0_4 = arith.constant 0 : index
    %3 = vector.load %arg3[%c0_3, %c0_4] : memref<1x128xf32, #tpu.memory_space<vmem>>, vector<1x128xf32>
    %4 = vector.broadcast %3 : vector<1x128xf32> to vector<8x128xf32>
    %5 = arith.addf %2, %4 : vector<8x128xf32>
    %cst_5 = arith.constant 0.000000e+00 : f32
    %6 = vector.broadcast %cst_5 : f32 to vector<8x128xf32>
    %7 = arith.maximumf %5, %6 : vector<8x128xf32>
    %c0_6 = arith.constant 0 : index
    %c0_7 = arith.constant 0 : index
    %8 = vector.load %arg6[%c0_6, %c0_7] : memref<128x128xf32, #tpu.memory_space<vmem>>, vector<128x128xf32>
    %cst_8 = arith.constant dense<0.000000e+00> : vector<8x128xf32>
    %9 = tpu.matmul %7, %8, %cst_8 {dimension_numbers = #tpu.dot_dimension_numbers<[1], [0], [0], [1], [0, 0, 1, 1], [], []>} : vector<8x128xf32>, vector<128x128xf32>, vector<8x128xf32> -> vector<8x128xf32>
    %10 = arith.mulf %7, %7 : vector<8x128xf32>
    %c0_9 = arith.constant 0 : index
    %c0_10 = arith.constant 0 : index
    %11 = vector.load %arg6[%c0_9, %c0_10] : memref<128x128xf32, #tpu.memory_space<vmem>>, vector<128x128xf32>
    %cst_11 = arith.constant dense<0.000000e+00> : vector<8x128xf32>
    %12 = tpu.matmul %10, %11, %cst_11 {dimension_numbers = #tpu.dot_dimension_numbers<[1], [0], [0], [1], [0, 0, 1, 1], [], []>} : vector<8x128xf32>, vector<128x128xf32>, vector<8x128xf32> -> vector<8x128xf32>
    %13 = arith.mulf %9, %9 : vector<8x128xf32>
    %14 = arith.subf %12, %13 : vector<8x128xf32>
    %15 = arith.subf %7, %9 : vector<8x128xf32>
    %cst_12 = arith.constant 9.99999974E-5 : f32
    %16 = vector.broadcast %cst_12 : f32 to vector<8x128xf32>
    %17 = arith.addf %14, %16 : vector<8x128xf32>
    %18 = math.rsqrt %17 : vector<8x128xf32>
    %19 = arith.mulf %15, %18 : vector<8x128xf32>
    %c0_13 = arith.constant 0 : index
    %c0_14 = arith.constant 0 : index
    %20 = vector.load %arg4[%c0_13, %c0_14] : memref<1x128xf32, #tpu.memory_space<vmem>>, vector<1x128xf32>
    %21 = vector.broadcast %20 : vector<1x128xf32> to vector<8x128xf32>
    %22 = arith.mulf %19, %21 : vector<8x128xf32>
    %c0_15 = arith.constant 0 : index
    %c0_16 = arith.constant 0 : index
    %23 = vector.load %arg5[%c0_15, %c0_16] : memref<1x128xf32, #tpu.memory_space<vmem>>, vector<1x128xf32>
    %24 = vector.broadcast %23 : vector<1x128xf32> to vector<8x128xf32>
    %25 = arith.addf %22, %24 : vector<8x128xf32>
    %c0_17 = arith.constant 0 : index
    %c0_18 = arith.constant 0 : index
    %26 = vector.load %arg7[%c0_17, %c0_18] : memref<8x128xf32, #tpu.memory_space<vmem>>, vector<8x128xf32>
    tpu.vector_store %arg7[%c0_17, %c0_18], %25 {strides = array<i32>} : memref<8x128xf32, #tpu.memory_space<vmem>>, vector<8x128xf32>,
    return
  }
  func.func @transform_0(%arg0: i32) -> (i32, i32) {
    %c0_i32 = arith.constant 0 : i32
    %c0_i32_0 = arith.constant 0 : i32
    return %arg0, %c0_i32 : i32, i32
  }
  func.func @transform_1(%arg0: i32) -> (i32, i32) {
    %c0_i32 = arith.constant 0 : i32
    %c0_i32_0 = arith.constant 0 : i32
    %c0_i32_1 = arith.constant 0 : i32
    return %c0_i32, %c0_i32_0 : i32, i32
  }
  func.func @transform_2(%arg0: i32) -> (i32, i32) {
    %c0_i32 = arith.constant 0 : i32
    %c0_i32_0 = arith.constant 0 : i32
    %c0_i32_1 = arith.constant 0 : i32
    return %c0_i32, %c0_i32_0 : i32, i32
  }
  func.func @transform_3(%arg0: i32) -> (i32, i32) {
    %c0_i32 = arith.constant 0 : i32
    %c0_i32_0 = arith.constant 0 : i32
    %c0_i32_1 = arith.constant 0 : i32
    return %c0_i32, %c0_i32_0 : i32, i32
  }
  func.func @transform_4(%arg0: i32) -> (i32, i32) {
    %c0_i32 = arith.constant 0 : i32
    %c0_i32_0 = arith.constant 0 : i32
    %c0_i32_1 = arith.constant 0 : i32
    return %c0_i32, %c0_i32_0 : i32, i32
  }
  func.func @transform_5(%arg0: i32) -> (i32, i32) {
    %c0_i32 = arith.constant 0 : i32
    %c0_i32_0 = arith.constant 0 : i32
    %c0_i32_1 = arith.constant 0 : i32
    return %c0_i32, %c0_i32_0 : i32, i32
  }
  func.func @transform_6(%arg0: i32) -> (i32, i32) {
    %c0_i32 = arith.constant 0 : i32
    %c0_i32_0 = arith.constant 0 : i32
    return %arg0, %c0_i32 : i32, i32
  }
}

</mosaic_0001>

<bundles_post_ra>
// kernel: tpu_custom_call.1
= control target key start
LH: loop header
LB: loop body
LE: loop exit
PB: predicated region body
PF: predicated region fallthrough
CT: control target
= control target key end

     0   :  { %11 = vsyncpa [#allocation3], 0  ;;  %s590_s0 = inlined_call_operand.vmem [shape: f32[8,4], index: 0, kind: input, shape index: {}]   ;;  %s591_s1 = inlined_call_operand.vmem [shape: f32[4,128], index: 1, kind: input, shape index: {}]   ;;  %s592_s2 = inlined_call_operand.vmem [shape: f32[1,128], index: 2, kind: input, shape index: {}]   ;;  %s593_s3 = inlined_call_operand.vmem [shape: f32[1,128], index: 3, kind: input, shape index: {}]   ;;  %s594_s4 = inlined_call_operand.vmem [shape: f32[1,128], index: 4, kind: input, shape index: {}]   ;;  %s595_s5 = inlined_call_operand.hbm [shape: f32[128,128], index: 5, kind: input, shape index: {}]   ;;  %s596_s6 = inlined_call_operand.hbm [shape: f32[8,128], index: 6, kind: output, shape index: {}]  }
   0x1   :  { %12 = vsyncpa [#allocation4], 0  ;;  %s489_s21 = smov [#allocation2]  }
   0x2   :  { %s28_s22 = sshll.u32 %s489_s21, 4  ;;  %s29_s22 = int_to_ptr.vmem [resolvable:$true] %s28_s22 }
   0x3   :  { %s453_s23 = scalar_lea.vmem %s29_s22, 2048  ;;  %p458_p1 = scmp.lt.s32.totalorder %s29_s22, %s29_s22 }
   0x4   :  { %p454_p0 = scmp.ne.s32.totalorder %s29_s22, %s453_s23  ;;  %p459_p2 = scmp.lt.s32.totalorder %s453_s23, %s453_s23 }
   0x6   :  { %p460_p3 = por %p459_p2, %p458_p1 }
   0x8   :  { %p461_p4 = pnand %p460_p3, %p454_p0 }
   0xa   :  { %464 = shalt.err (!%p461_p4)
}
   0xb   :  { %s490_s24 = smov 128   ;;  %s491_s25 = smov 8  }
   0xc   :  { %34 = dma.hbm_to_vmem [thread:$0]  %s595_s5, 2048, %s29_s22, [#allocation3], %s490_s24, %s490_s24, %s491_s25  }
   0xd   :  { %485 = dma.done.wait [#allocation3], 2048  }
   0xe   :  { %486 = vsyncadd [#allocation3], 4294965248  ;;  %v492_v0 = vmov 0.0   ;;  %vm493_vm0 = vmmov 0   ;;  %vm51_vm1 = vcmask 1043456   ;;  %vm47_vm2 = vcmask 31744  }
   0xf   :  { %362 = vmatprep.subr.mxu0 %v492_v0  ;;  %364 = vmatprep.mubr.msk.f32.mxu0 %vm493_vm0, %v492_v0  ;;  %v39_v1 = vld [vmem:[%s591_s1] sm:$0xf]  ;;  %v141_v3 = vld [vmem:[#allocation2 + $0x78] sm:$0xff]  ;;  %v140_v4 = vld [vmem:[#allocation2 + $0x70] sm:$0xff]  ;;  %s494_s10 = smov [#allocation5]  }
  0x10   :  { %367 = vmatprep.subr.mxu1 %v492_v0  ;;  %399 = vmatprep.mubr.msk.f32.mxu1 %vm493_vm0, %v492_v0  ;;  %v38_v2 = vld [vmem:[%s590_s0] sm:$0xff]  ;;  %v139_v5 = vld [vmem:[#allocation2 + $0x68] sm:$0xff]  ;;  %v137_v7 = vld [vmem:[#allocation2 + $0x58] sm:$0xff]  ;;  %s312_s11 = sshll.u32 %s494_s10, 4  ;;  %s313_s11 = int_to_ptr.vmem [resolvable:$true] %s312_s11 }
  0x11   :  { %363 = vmatpush3.msk.msra.mxu0 %vm51_vm1, %v39_v1  ;;  %368 = vmatpush3.msra.mxu1 %v141_v3  ;;  %v138_v6 = vld [vmem:[#allocation2 + $0x60] sm:$0xff]  ;;  %v136_v8 = vld [vmem:[#allocation2 + $0x50] sm:$0xff]  ;;  %v135_v9 = vld [vmem:[#allocation2 + $0x48] sm:$0xff]  ;;  %s465_s12 = scalar_lea.vmem %s313_s11, 128  ;;  %p470_p6 = scmp.lt.s32.totalorder %s313_s11, %s313_s11 }
  0x12   :  { %365 = vmatmul.mubr.msk.f32.vlgmr.msra.gmra.mxu0 %vm47_vm2, %v38_v2  ;;  %369 = vmatprep.subr.mxu1 %v492_v0  ;;  %v134_v10 = vld [vmem:[#allocation2 + $0x40] sm:$0xff]  ;;  %v133_v11 = vld [vmem:[#allocation2 + $0x38] sm:$0xff]  ;;  %v132_v12 = vld [vmem:[#allocation2 + $0x30] sm:$0xff]  ;;  %p466_p5 = scmp.ne.s32.totalorder %s313_s11, %s465_s12  ;;  %p471_p7 = scmp.lt.s32.totalorder %s465_s12, %s465_s12 }
  0x13   :  { %402 = vmatprep.subr.mxu0 %v492_v0  ;;  %370 = vmatpush3.msra.mxu1 %v140_v4  ;;  %v131_v13 = vld [vmem:[#allocation2 + $0x28] sm:$0xff]  ;;  %v130_v14 = vld [vmem:[#allocation2 + $0x20] sm:$0xff]  ;;  %v129_v15 = vld [vmem:[#allocation2 + $0x18] sm:$0xff] }
  0x14   :  { %403 = vmatpush3.msra.mxu0 %v141_v3  ;;  %371 = vmatprep.subr.mxu1 %v492_v0  ;;  %v128_v16 = vld [vmem:[#allocation2 + $0x10] sm:$0xff]  ;;  %v127_v17 = vld [vmem:[#allocation2 + $0x8] sm:$0xff]  ;;  %v126_v18 = vld [vmem:[#allocation2] sm:$0xff]  ;;  %p472_p8 = por %p471_p7, %p470_p6 }
  0x15   :  { %404 = vmatprep.subr.mxu0 %v492_v0  ;;  %372 = vmatpush3.msra.mxu1 %v139_v5  ;;  %v321_v19 = vld [vmem:[%s592_s2] ss:$0 sm:$0xff] }
  0x16   :  { %405 = vmatpush3.msra.mxu0 %v140_v4  ;;  %373 = vmatprep.subr.mxu1 %v492_v0  ;;  %v324_v34 = vld [vmem:[%s593_s3] ss:$0 sm:$0xff]  ;;  %p473_p9 = pnand %p472_p8, %p466_p5 }
  0x17   :  { %406 = vmatprep.subr.mxu0 %v492_v0  ;;  %374 = vmatpush3.msra.mxu1 %v138_v6  ;;  %v325_v36 = vld [vmem:[%s594_s4] ss:$0 sm:$0xff] }
  0x18   :  { %407 = vmatpush3.msra.mxu0 %v139_v5  ;;  %375 = vmatprep.subr.mxu1 %v492_v0 }
  0x19   :  { %408 = vmatprep.subr.mxu0 %v492_v0  ;;  %376 = vmatpush3.msra.mxu1 %v137_v7 }
  0x1a   :  { %409 = vmatpush3.msra.mxu0 %v138_v6  ;;  %377 = vmatprep.subr.mxu1 %v492_v0 }
  0x1b   :  { %410 = vmatprep.subr.mxu0 %v492_v0  ;;  %378 = vmatpush3.msra.mxu1 %v136_v8 }
  0x1c   :  { %411 = vmatpush3.msra.mxu0 %v137_v7  ;;  %379 = vmatprep.subr.mxu1 %v492_v0 }
  0x1d   :  { %412 = vmatprep.subr.mxu0 %v492_v0  ;;  %380 = vmatpush3.msra.mxu1 %v135_v9 }
  0x1e   :  { %413 = vmatpush3.msra.mxu0 %v136_v8  ;;  %381 = vmatprep.subr.mxu1 %v492_v0 }
  0x1f   :  { %414 = vmatprep.subr.mxu0 %v492_v0  ;;  %382 = vmatpush3.msra.mxu1 %v134_v10 }
  0x20   :  { %415 = vmatpush3.msra.mxu0 %v135_v9  ;;  %383 = vmatprep.subr.mxu1 %v492_v0 }
  0x21   :  { %416 = vmatprep.subr.mxu0 %v492_v0  ;;  %384 = vmatpush3.msra.mxu1 %v133_v11 }
  0x22   :  { %417 = vmatpush3.msra.mxu0 %v134_v10  ;;  %385 = vmatprep.subr.mxu1 %v492_v0 }
  0x23   :  { %418 = vmatprep.subr.mxu0 %v492_v0  ;;  %386 = vmatpush3.msra.mxu1 %v132_v12 }
  0x24   :  { %419 = vmatpush3.msra.mxu0 %v133_v11  ;;  %387 = vmatprep.subr.mxu1 %v492_v0 }
  0x25   :  { %420 = vmatprep.subr.mxu0 %v492_v0  ;;  %388 = vmatpush3.msra.mxu1 %v131_v13 }
  0x26   :  { %421 = vmatpush3.msra.mxu0 %v132_v12  ;;  %389 = vmatprep.subr.mxu1 %v492_v0 }
  0x27   :  { %422 = vmatprep.subr.mxu0 %v492_v0  ;;  %390 = vmatpush3.msra.mxu1 %v130_v14 }
  0x28   :  { %423 = vmatpush3.msra.mxu0 %v131_v13  ;;  %391 = vmatprep.subr.mxu1 %v492_v0 }
  0x29   :  { %424 = vmatprep.subr.mxu0 %v492_v0  ;;  %392 = vmatpush3.msra.mxu1 %v129_v15 }
  0x2a   :  { %425 = vmatpush3.msra.mxu0 %v130_v14  ;;  %393 = vmatprep.subr.mxu1 %v492_v0 }
  0x2b   :  { %426 = vmatprep.subr.mxu0 %v492_v0  ;;  %434 = vmatprep.mubr.msk.f32.mxu0 %vm493_vm0, %v492_v0 }
  0x2c   :  { %427 = vmatpush3.msra.mxu0 %v129_v15  ;;  %394 = vmatpush3.msra.mxu1 %v128_v16 }
  0x2d   :  { %428 = vmatprep.subr.mxu0 %v492_v0  ;;  %395 = vmatprep.subr.mxu1 %v492_v0 }
  0x2e   :  { %429 = vmatpush3.msra.mxu0 %v128_v16  ;;  %396 = vmatpush3.msra.mxu1 %v127_v17 }
  0x2f   :  { %430 = vmatprep.subr.mxu0 %v492_v0  ;;  %397 = vmatprep.subr.mxu1 %v492_v0 }
  0x30   :  { %431 = vmatpush3.msra.mxu0 %v127_v17  ;;  %398 = vmatpush3.msra.mxu1 %v126_v18 }
  0x31   :  { %432 = vmatprep.subr.mxu0 %v492_v0 }
  0x32   :  { %433 = vmatpush3.msra.mxu0 %v126_v18 }
  0xd2   :  { %v121_v20 = vpop.f32.mrf.mxu0 }
  0xd3   :  { %v122_v21 = vadd.f32 %v321_v19, %v121_v20 }
  0xd4   :  { %v366_v22 = vpop.f32.mrf.mxu0 }
  0xd5   :  { %v125_v23 = vmax.f32 %v122_v21, 0.0 }
  0xd7   :  { %v212_v24 = vmul.f32 %v125_v23, %v125_v23  ;;  %400 = vmatmul.mubr.f32.vlgmr.msra.gmra.mxu1 %v125_v23 }
  0xd9   :  { %435 = vmatmul.mubr.f32.vlgmr.msra.gmra.mxu0 %v212_v24 }
 0x197   :  { %v208_v25 = vpop.f32.mrf.mxu1 }
 0x198   :  { %v283_v26 = vmul.f32 %v208_v25, %v208_v25  ;;  %v285_v32 = vsub.f32 %v125_v23, %v208_v25 }
 0x199   :  { %v401_v27 = vpop.f32.mrf.mxu1  ;;  %v279_v28 = vpop.f32.mrf.mxu0 }
 0x19a   :  { %v284_v29 = vsub.f32 %v279_v28, %v283_v26 }
 0x19b   :  { %v436_v30 = vpop.f32.mrf.mxu0 }
 0x19c   :  { %v286_v31 = vadd.f32 0.0001, %v284_v29 }
 0x19e   :  { %443 = vrsqrt.f32 %v286_v31 }
 0x1ab   :  { %v444_v33 = vpop.eup %443 }
 0x1ac   :  { %v288_v35 = vmul.f32 %v444_v33, %v285_v32 }
 0x1ae   :  { %v296_v37 = vmul.f32 %v324_v34, %v288_v35 }
 0x1b0   :  { %v304_v38 = vadd.f32 %v325_v36, %v296_v37 }
 0x1b2   :  { %305 = vst [vmem:[#allocation5] sm:$0xff] %v304_v38 }
 0x1b3   :  { %476 = shalt.err (!%p473_p9)
}
 0x1b4   :  { %315 = dma.vmem_to_hbm [thread:$0]  %s313_s11, 128, %s596_s6, [#allocation4]  }
 0x1b5   :  { %487 = dma.done.wait [#allocation4], 128  }
 0x1b6   :  { %488 = vsyncadd [#allocation4], 4294967168 }
 0x1b7   :  { %319 = vsyncpa [#allocation3], 1 }
 0x1b8   :  { %320 = vsyncpa [#allocation4], 1 }

</bundles_post_ra>
